<compile_context>
chip_gen: v6e
topology: v6e:2x2x1
jax: 0.10.0
libtpu: 0.0.40
codegen_flags: <defaults>
</compile_context>

<pallas_src>
import jax
import jax.numpy as jnp
from jax.experimental import pallas as pl
from jax.experimental.pallas import tpu as pltpu


def _make_outconv_kernel(cin, cout, fold, use_mxu):
    def kernel(x_ref, w_ref, b_ref, o_ref):
        # x_ref: (fold*cin, TM)   spatial on lanes, folded batch*channels on sublanes
        # w_ref: (cout, cin), b_ref: (cout, 1)   (resident, tiny)
        # o_ref: (fold*cout, TM)
        w = w_ref[...].astype(jnp.float32)
        b = b_ref[...].astype(jnp.float32)
        for img in range(fold):
            base = img * cin
            if use_mxu:
                acc = jnp.dot(
                    w, x_ref[base:base + cin, :].astype(jnp.float32),
                    preferred_element_type=jnp.float32) + b
            else:
                # Unrolled VPU broadcast-FMA over the tiny K axis; bias folded
                # into the first term.  (cout,1)*(1,TM) broadcasts -> (cout,TM).
                acc = b + w[:, 0:1] * x_ref[base:base + 1, :].astype(jnp.float32)
                for c in range(1, cin):
                    acc = acc + w[:, c:c + 1] * x_ref[base + c:base + c + 1, :].astype(jnp.float32)
            o_ref[img * cout:(img + 1) * cout, :] = acc.astype(o_ref.dtype)
    return kernel


def outconv_pallas(x_nchw, weight, bias, *, tile_m=65536):
    """1x1 Conv2d forward.

    x_nchw: (N, Cin, H, W)
    weight: (Cout, Cin, 1, 1)   (PyTorch nn.Conv2d layout)
    bias:   (Cout,)
    returns (N, Cout, H, W)
    """
    N, Cin, H, W = x_nchw.shape
    Cout = weight.shape[0]
    HW = H * W
    itemsize = jnp.dtype(x_nchw.dtype).itemsize

    # --- fold batch images into the sublane axis to fill the (8,128) tile ---
    fold = 1
    for f in (8, 4, 2):
        if N % f == 0 and f * Cin <= 8:
            fold = f
            break
    NB = N // fold

    # Free, row-major-contiguous reshapes only.
    x3 = x_nchw.reshape(NB, fold * Cin, HW)     # (NB, fold*Cin, H*W)
    w_mat = weight.reshape(Cout, Cin)           # (Cout, Cin)
    b_col = bias.reshape(Cout, 1)               # (Cout, 1)

    # --- spatial tile size (lane axis) ---
    # Never bigger than the spatial extent (rounded up to a lane multiple).
    tile_m = min(tile_m, pl.cdiv(HW, 128) * 128)
    # Keep the double-buffered in+out blocks well inside scoped VMEM on every
    # generation (v7x has only 64 MiB physical / 32 MiB default-scoped).
    vmem_budget = 40 * 1024 * 1024
    bytes_per_lane = 2 * (fold * Cin + fold * Cout) * itemsize
    tile_m = min(tile_m, max(128, (vmem_budget // bytes_per_lane // 128) * 128))
    # Megacore (v7x) load balance: prefer >= 4 total grid blocks, but only if
    # each resulting tile still carries a large (>= ~1.5 MiB) per-step payload.
    want_blocks = 4
    if NB < want_blocks:
        want_tiles = pl.cdiv(want_blocks, NB)
        min_split_tile = 16384
        if HW >= want_tiles * min_split_tile:
            tile_m = min(tile_m, pl.cdiv(pl.cdiv(HW, want_tiles), 128) * 128)
    tile_m = max(128, tile_m)
    n_tiles = pl.cdiv(HW, tile_m)

    # Tiny-K contractions are cheaper on the VPU; fall back to MXU for big Cin.
    use_mxu = Cin > 16
    kernel = _make_outconv_kernel(Cin, Cout, fold, use_mxu)

    cost = pl.CostEstimate(
        flops=2 * N * HW * Cin * Cout,
        bytes_accessed=itemsize * (N * HW * (Cin + Cout) + Cin * Cout + Cout),
        transcendentals=0,
    )

    out3 = pl.pallas_call(
        kernel,
        out_shape=jax.ShapeDtypeStruct((NB, fold * Cout, HW), x_nchw.dtype),
        grid_spec=pltpu.PrefetchScalarGridSpec(
            num_scalar_prefetch=0,
            grid=(NB, n_tiles),
            in_specs=[
                pl.BlockSpec((None, fold * Cin, tile_m), lambda n, i: (n, 0, i)),
                pl.BlockSpec((Cout, Cin), lambda n, i: (0, 0)),
                pl.BlockSpec((Cout, 1), lambda n, i: (0, 0)),
            ],
            out_specs=pl.BlockSpec((None, fold * Cout, tile_m), lambda n, i: (n, 0, i)),
        ),
        compiler_params=pltpu.CompilerParams(
            dimension_semantics=("parallel", "parallel"),
            vmem_limit_bytes=48 * 1024 * 1024,
        ),
        cost_estimate=cost,
    )(x3, w_mat, b_col)

    # (NB, fold*Cout, HW) is row-major identical to (N, Cout, H, W): free reshape.
    return out3.reshape(N, Cout, H, W)


if __name__ == "__main__":
    in_ch, out_ch = 4, 8
    N, H, W = 2, 16, 16

    key = jax.random.PRNGKey(0)
    kx, kw, kb = jax.random.split(key, 3)

    x = jax.random.normal(kx, (N, in_ch, H, W), dtype=jnp.float32)
    # deterministic synthetic parameters matching nn.Conv2d(in_ch, out_ch, 1) shapes
    weight = jax.random.normal(kw, (out_ch, in_ch, 1, 1), dtype=jnp.float32) * 0.1
    bias = jax.random.normal(kb, (out_ch,), dtype=jnp.float32) * 0.1

    out = outconv_pallas(x, weight, bias)
    out = jax.block_until_ready(out)

    # reference check (pure JAX): 1x1 conv == einsum over channels + bias
    ref = jnp.einsum("nchw,oc->nohw", x, weight.reshape(out_ch, in_ch)) \
        + bias[None, :, None, None]
    assert out.shape == (N, out_ch, H, W)
    assert jnp.allclose(out, ref, atol=1e-5, rtol=1e-5)

    print("KERNEL_OK")
</pallas_src>

<mosaic_0001>
module attributes {stable_mosaic.version = 11 : i64} {
  func.func @kernel(%arg0: i32, %arg1: i32, %arg2: memref<1x8x256xf32, #tpu.memory_space<vmem>>, %arg3: memref<8x4xf32, #tpu.memory_space<vmem>>, %arg4: memref<8x1xf32, #tpu.memory_space<vmem>>, %arg5: memref<1x16x256xf32, #tpu.memory_space<vmem>>) attributes {dimension_semantics = [#tpu.dimension_semantics<parallel>, #tpu.dimension_semantics<parallel>], iteration_bounds = array<i64: 1, 1>, scalar_prefetch = 0 : i64, scratch_operands = 0 : i64, tpu.core_type = #tpu.core_type<tc>, window_params = [{transform_indices = @transform_0, window_bounds = array<i64: 1, 8, 256>}, {pipeline_mode = #tpu.pipeline_mode<synchronous>, transform_indices = @transform_1, window_bounds = array<i64: 8, 4>}, {pipeline_mode = #tpu.pipeline_mode<synchronous>, transform_indices = @transform_2, window_bounds = array<i64: 8, 1>}, {transform_indices = @transform_3, window_bounds = array<i64: 1, 16, 256>}]} {
    %c0 = arith.constant 0 : index
    %c0_0 = arith.constant 0 : index
    %0 = vector.load %arg3[%c0, %c0_0] : memref<8x4xf32, #tpu.memory_space<vmem>>, vector<8x4xf32>
    %c0_1 = arith.constant 0 : index
    %c0_2 = arith.constant 0 : index
    %1 = vector.load %arg4[%c0_1, %c0_2] : memref<8x1xf32, #tpu.memory_space<vmem>>, vector<8x1xf32>
    %2 = vector.extract_strided_slice %0 {offsets = [0, 0], sizes = [8, 1], strides = [1, 1]} : vector<8x4xf32> to vector<8x1xf32>
    %c0_3 = arith.constant 0 : index
    %c0_4 = arith.constant 0 : index
    %c0_5 = arith.constant 0 : index
    %3 = vector.load %arg2[%c0_3, %c0_4, %c0_5] : memref<1x8x256xf32, #tpu.memory_space<vmem>>, vector<1x1x256xf32>
    %4 = vector.shape_cast %3 : vector<1x1x256xf32> to vector<1x256xf32>
    %5 = vector.broadcast %2 : vector<8x1xf32> to vector<8x256xf32>
    %6 = vector.broadcast %4 : vector<1x256xf32> to vector<8x256xf32>
    %7 = arith.mulf %5, %6 : vector<8x256xf32>
    %8 = vector.broadcast %1 : vector<8x1xf32> to vector<8x256xf32>
    %9 = arith.addf %8, %7 : vector<8x256xf32>
    %10 = vector.extract_strided_slice %0 {offsets = [0, 1], sizes = [8, 1], strides = [1, 1]} : vector<8x4xf32> to vector<8x1xf32>
    %c0_6 = arith.constant 0 : index
    %c1 = arith.constant 1 : index
    %c0_7 = arith.constant 0 : index
    %11 = vector.load %arg2[%c0_6, %c1, %c0_7] : memref<1x8x256xf32, #tpu.memory_space<vmem>>, vector<1x1x256xf32>
    %12 = vector.shape_cast %11 : vector<1x1x256xf32> to vector<1x256xf32>
    %13 = vector.broadcast %10 : vector<8x1xf32> to vector<8x256xf32>
    %14 = vector.broadcast %12 : vector<1x256xf32> to vector<8x256xf32>
    %15 = arith.mulf %13, %14 : vector<8x256xf32>
    %16 = arith.addf %9, %15 : vector<8x256xf32>
    %17 = vector.extract_strided_slice %0 {offsets = [0, 2], sizes = [8, 1], strides = [1, 1]} : vector<8x4xf32> to vector<8x1xf32>
    %c0_8 = arith.constant 0 : index
    %c2 = arith.constant 2 : index
    %c0_9 = arith.constant 0 : index
    %18 = vector.load %arg2[%c0_8, %c2, %c0_9] : memref<1x8x256xf32, #tpu.memory_space<vmem>>, vector<1x1x256xf32>
    %19 = vector.shape_cast %18 : vector<1x1x256xf32> to vector<1x256xf32>
    %20 = vector.broadcast %17 : vector<8x1xf32> to vector<8x256xf32>
    %21 = vector.broadcast %19 : vector<1x256xf32> to vector<8x256xf32>
    %22 = arith.mulf %20, %21 : vector<8x256xf32>
    %23 = arith.addf %16, %22 : vector<8x256xf32>
    %24 = vector.extract_strided_slice %0 {offsets = [0, 3], sizes = [8, 1], strides = [1, 1]} : vector<8x4xf32> to vector<8x1xf32>
    %c0_10 = arith.constant 0 : index
    %c3 = arith.constant 3 : index
    %c0_11 = arith.constant 0 : index
    %25 = vector.load %arg2[%c0_10, %c3, %c0_11] : memref<1x8x256xf32, #tpu.memory_space<vmem>>, vector<1x1x256xf32>
    %26 = vector.shape_cast %25 : vector<1x1x256xf32> to vector<1x256xf32>
    %27 = vector.broadcast %24 : vector<8x1xf32> to vector<8x256xf32>
    %28 = vector.broadcast %26 : vector<1x256xf32> to vector<8x256xf32>
    %29 = arith.mulf %27, %28 : vector<8x256xf32>
    %30 = arith.addf %23, %29 : vector<8x256xf32>
    %c0_12 = arith.constant 0 : index
    %c0_13 = arith.constant 0 : index
    %c0_14 = arith.constant 0 : index
    %31 = vector.load %arg5[%c0_12, %c0_13, %c0_14] : memref<1x16x256xf32, #tpu.memory_space<vmem>>, vector<1x8x256xf32>
    %32 = vector.shape_cast %31 : vector<1x8x256xf32> to vector<8x256xf32>
    %33 = vector.shape_cast %30 : vector<8x256xf32> to vector<1x8x256xf32>
    tpu.vector_store %arg5[%c0_12, %c0_13, %c0_14], %33 {strides = array<i32>} : memref<1x16x256xf32, #tpu.memory_space<vmem>>, vector<1x8x256xf32>,
    %34 = vector.extract_strided_slice %0 {offsets = [0, 0], sizes = [8, 1], strides = [1, 1]} : vector<8x4xf32> to vector<8x1xf32>
    %c0_15 = arith.constant 0 : index
    %c4 = arith.constant 4 : index
    %c0_16 = arith.constant 0 : index
    %35 = vector.load %arg2[%c0_15, %c4, %c0_16] : memref<1x8x256xf32, #tpu.memory_space<vmem>>, vector<1x1x256xf32>
    %36 = vector.shape_cast %35 : vector<1x1x256xf32> to vector<1x256xf32>
    %37 = vector.broadcast %34 : vector<8x1xf32> to vector<8x256xf32>
    %38 = vector.broadcast %36 : vector<1x256xf32> to vector<8x256xf32>
    %39 = arith.mulf %37, %38 : vector<8x256xf32>
    %40 = vector.broadcast %1 : vector<8x1xf32> to vector<8x256xf32>
    %41 = arith.addf %40, %39 : vector<8x256xf32>
    %42 = vector.extract_strided_slice %0 {offsets = [0, 1], sizes = [8, 1], strides = [1, 1]} : vector<8x4xf32> to vector<8x1xf32>
    %c0_17 = arith.constant 0 : index
    %c5 = arith.constant 5 : index
    %c0_18 = arith.constant 0 : index
    %43 = vector.load %arg2[%c0_17, %c5, %c0_18] : memref<1x8x256xf32, #tpu.memory_space<vmem>>, vector<1x1x256xf32>
    %44 = vector.shape_cast %43 : vector<1x1x256xf32> to vector<1x256xf32>
    %45 = vector.broadcast %42 : vector<8x1xf32> to vector<8x256xf32>
    %46 = vector.broadcast %44 : vector<1x256xf32> to vector<8x256xf32>
    %47 = arith.mulf %45, %46 : vector<8x256xf32>
    %48 = arith.addf %41, %47 : vector<8x256xf32>
    %49 = vector.extract_strided_slice %0 {offsets = [0, 2], sizes = [8, 1], strides = [1, 1]} : vector<8x4xf32> to vector<8x1xf32>
    %c0_19 = arith.constant 0 : index
    %c6 = arith.constant 6 : index
    %c0_20 = arith.constant 0 : index
    %50 = vector.load %arg2[%c0_19, %c6, %c0_20] : memref<1x8x256xf32, #tpu.memory_space<vmem>>, vector<1x1x256xf32>
    %51 = vector.shape_cast %50 : vector<1x1x256xf32> to vector<1x256xf32>
    %52 = vector.broadcast %49 : vector<8x1xf32> to vector<8x256xf32>
    %53 = vector.broadcast %51 : vector<1x256xf32> to vector<8x256xf32>
    %54 = arith.mulf %52, %53 : vector<8x256xf32>
    %55 = arith.addf %48, %54 : vector<8x256xf32>
    %56 = vector.extract_strided_slice %0 {offsets = [0, 3], sizes = [8, 1], strides = [1, 1]} : vector<8x4xf32> to vector<8x1xf32>
    %c0_21 = arith.constant 0 : index
    %c7 = arith.constant 7 : index
    %c0_22 = arith.constant 0 : index
    %57 = vector.load %arg2[%c0_21, %c7, %c0_22] : memref<1x8x256xf32, #tpu.memory_space<vmem>>, vector<1x1x256xf32>
    %58 = vector.shape_cast %57 : vector<1x1x256xf32> to vector<1x256xf32>
    %59 = vector.broadcast %56 : vector<8x1xf32> to vector<8x256xf32>
    %60 = vector.broadcast %58 : vector<1x256xf32> to vector<8x256xf32>
    %61 = arith.mulf %59, %60 : vector<8x256xf32>
    %62 = arith.addf %55, %61 : vector<8x256xf32>
    %c0_23 = arith.constant 0 : index
    %c8 = arith.constant 8 : index
    %c0_24 = arith.constant 0 : index
    %63 = vector.load %arg5[%c0_23, %c8, %c0_24] : memref<1x16x256xf32, #tpu.memory_space<vmem>>, vector<1x8x256xf32>
    %64 = vector.shape_cast %63 : vector<1x8x256xf32> to vector<8x256xf32>
    %65 = vector.shape_cast %62 : vector<8x256xf32> to vector<1x8x256xf32>
    tpu.vector_store %arg5[%c0_23, %c8, %c0_24], %65 {strides = array<i32>} : memref<1x16x256xf32, #tpu.memory_space<vmem>>, vector<1x8x256xf32>,
    return
  }
  func.func @transform_0(%arg0: i32, %arg1: i32) -> (i32, i32, i32) {
    %c0_i32 = arith.constant 0 : i32
    %c0_i32_0 = arith.constant 0 : i32
    return %arg0, %c0_i32, %arg1 : i32, i32, i32
  }
  func.func @transform_1(%arg0: i32, %arg1: i32) -> (i32, i32) {
    %c0_i32 = arith.constant 0 : i32
    %c0_i32_0 = arith.constant 0 : i32
    %c0_i32_1 = arith.constant 0 : i32
    return %c0_i32, %c0_i32_0 : i32, i32
  }
  func.func @transform_2(%arg0: i32, %arg1: i32) -> (i32, i32) {
    %c0_i32 = arith.constant 0 : i32
    %c0_i32_0 = arith.constant 0 : i32
    %c0_i32_1 = arith.constant 0 : i32
    return %c0_i32, %c0_i32_0 : i32, i32
  }
  func.func @transform_3(%arg0: i32, %arg1: i32) -> (i32, i32, i32) {
    %c0_i32 = arith.constant 0 : i32
    %c0_i32_0 = arith.constant 0 : i32
    return %arg0, %c0_i32, %arg1 : i32, i32, i32
  }
}

</mosaic_0001>

<bundles_post_ra>
// kernel: tpu_custom_call.1
= control target key start
LH: loop header
LB: loop body
LE: loop exit
PB: predicated region body
PF: predicated region fallthrough
CT: control target
= control target key end

     0   :  { %v234_v1 = vmov 0   ;;  %v235_v2 = vmov 1   ;;  %s294_s0 = inlined_call_operand.vmem [shape: f32[1,8,256], index: 0, kind: input, shape index: {}]   ;;  %s295_s1 = inlined_call_operand.vmem [shape: f32[8,4], index: 1, kind: input, shape index: {}]   ;;  %s296_s2 = inlined_call_operand.vmem [shape: f32[8,1], index: 2, kind: input, shape index: {}]   ;;  %s297_s3 = inlined_call_operand.hbm [shape: f32[1,16,256], index: 3, kind: output, shape index: {}]  }
   0x1   :  { %v15_v0 = vld [vmem:[%s295_s1] sm:$0xff]  ;;  %208 = vset.pattern.permute.xlu0 %v234_v1  ;;  %209 = vset.pattern.permute.xlu1 %v235_v2 }
   0x2   :  { %20 = vperm.xlu0 %208, %v15_v0   ;;  %46 = vperm.xlu1 %209, %v15_v0   ;;  %v16_v3 = vld [vmem:[%s296_s2] sm:$0xff] }
   0x3   :  { %8 = vsyncpa [#allocation3], 0  ;;  %v236_v4 = vmov 2   ;;  %v237_v5 = vmov 3   ;;  %v24_v6 = vlaneseq }
   0x4   :  { %v17_v10 = vld [vmem:[%s294_s0] ss:$8 sm:$0x3]  ;;  %v197_v11 = vld [vmem:[%s294_s0 + $0x4] ss:$8 sm:$0x3] }
   0x5   :  { %v25_v7 = vshrl.u32 %v24_v6, 7  ;;  %v194_v12 = vld [vmem:[%s294_s0 + $0x1] ss:$8 sm:$0x3] }
   0x6   :  { %38 = vperm.xlu0 %208, %v16_v3   ;;  %210 = vset.pattern.permute.xlu1 %v236_v4  ;;  %v198_v13 = vld [vmem:[%s294_s0 + $0x5] ss:$8 sm:$0x3]  ;;  %v195_v14 = vld [vmem:[%s294_s0 + $0x2] ss:$8 sm:$0x3] }
   0x7   :  { %67 = vperm.xlu1 %210, %v15_v0   ;;  %v26_v8 = vsub.s32 0, %v25_v7  ;;  %v30_v9 = vsub.s32 1, %v25_v7  ;;  %v199_v15 = vld [vmem:[%s294_s0 + $0x6] ss:$8 sm:$0x3] }
   0x8   :  { %v196_v20 = vld [vmem:[%s294_s0 + $0x3] ss:$8 sm:$0x3]  ;;  %v200_v21 = vld [vmem:[%s294_s0 + $0x7] ss:$8 sm:$0x3] }
   0x9   :  { %v27_v16 = vrot.slane %v17_v10, %v26_v8  ;;  %v31_v17 = vrot.slane %v17_v10, %v30_v9  ;;  %v114_v18 = vrot.slane %v197_v11, %v26_v8  ;;  %v118_v19 = vrot.slane %v197_v11, %v30_v9  ;;  %s238_s0 = smov [#allocation2]  }
   0xa   :  { %211 = vset.pattern.permute.xlu0 %v237_v5  ;;  %v53_v23 = vrot.slane %v194_v12, %v26_v8  ;;  %v57_v24 = vrot.slane %v194_v12, %v30_v9  ;;  %v131_v25 = vrot.slane %v198_v13, %v26_v8  ;;  %v135_v26 = vrot.slane %v198_v13, %v30_v9  ;;  %s183_s30 = sshll.u32 %s238_s0, 4  ;;  %s184_s30 = int_to_ptr.vmem [resolvable:$true] %s183_s30 }
   0xb   :  { %88 = vperm.xlu0 %211, %v15_v0   ;;  %v74_v28 = vrot.slane %v195_v14, %v26_v8  ;;  %v78_v29 = vrot.slane %v195_v14, %v30_v9  ;;  %v148_v30 = vrot.slane %v199_v15, %v26_v8  ;;  %v152_v31 = vrot.slane %v199_v15, %v30_v9  ;;  %s212_s4 = scalar_lea.vmem %s184_s30, 512  ;;  %p217_p1 = scmp.lt.s32.totalorder %s184_s30, %s184_s30 }
   0xc   :  { %v95_v32 = vrot.slane %v196_v20, %v26_v8  ;;  %v99_v33 = vrot.slane %v196_v20, %v30_v9  ;;  %v165_v34 = vrot.slane %v200_v21, %v26_v8  ;;  %v169_v35 = vrot.slane %v200_v21, %v30_v9  ;;  %p213_p0 = scmp.ne.s32.totalorder %s184_s30, %s212_s4  ;;  %p218_p2 = scmp.lt.s32.totalorder %s212_s4, %s212_s4 }
   0xe   :  { %p219_p3 = por %p218_p2, %p217_p1 }
  0x10   :  { %p220_p4 = pnand %p219_p3, %p213_p0 }
  0x7d   :  { %v21_v22 = vpop.permute.xlu0 %20  ;;  %v47_v27 = vpop.permute.xlu1 %46 }
  0x7e   :  { %v34_v36 = vmul.f32 %v27_v16, %v21_v22  ;;  %v35_v37 = vmul.f32 %v31_v17, %v21_v22  ;;  %v121_v38 = vmul.f32 %v114_v18, %v21_v22  ;;  %v122_v39 = vmul.f32 %v118_v19, %v21_v22 }
  0x7f   :  { %v60_v40 = vmul.f32 %v53_v23, %v47_v27  ;;  %v61_v41 = vmul.f32 %v57_v24, %v47_v27  ;;  %v138_v42 = vmul.f32 %v131_v25, %v47_v27  ;;  %v139_v43 = vmul.f32 %v135_v26, %v47_v27 }
  0x81   :  { %v39_v44 = vpop.permute.xlu0 %38 }
  0x82   :  { %v41_v45 = vadd.f32 %v39_v44, %v34_v36  ;;  %v42_v46 = vadd.f32 %v39_v44, %v35_v37  ;;  %v123_v47 = vadd.f32 %v121_v38, %v39_v44  ;;  %v124_v48 = vadd.f32 %v122_v39, %v39_v44  ;;  %v68_v49 = vpop.permute.xlu1 %67 }
  0x83   :  { %v81_v50 = vmul.f32 %v74_v28, %v68_v49  ;;  %v82_v51 = vmul.f32 %v78_v29, %v68_v49  ;;  %v155_v52 = vmul.f32 %v148_v30, %v68_v49  ;;  %v156_v53 = vmul.f32 %v152_v31, %v68_v49 }
  0x84   :  { %v62_v54 = vadd.f32 %v60_v40, %v41_v45  ;;  %v63_v55 = vadd.f32 %v61_v41, %v42_v46  ;;  %v140_v56 = vadd.f32 %v138_v42, %v123_v47  ;;  %v141_v57 = vadd.f32 %v139_v43, %v124_v48 }
  0x86   :  { %v83_v58 = vadd.f32 %v81_v50, %v62_v54  ;;  %v84_v59 = vadd.f32 %v82_v51, %v63_v55  ;;  %v157_v60 = vadd.f32 %v155_v52, %v140_v56  ;;  %v158_v61 = vadd.f32 %v156_v53, %v141_v57  ;;  %v89_v62 = vpop.permute.xlu0 %88 }
  0x87   :  { %v102_v63 = vmul.f32 %v95_v32, %v89_v62  ;;  %v103_v0 = vmul.f32 %v99_v33, %v89_v62  ;;  %v172_v1 = vmul.f32 %v165_v34, %v89_v62  ;;  %v173_v2 = vmul.f32 %v169_v35, %v89_v62 }
  0x89   :  { %v104_v3 = vadd.f32 %v102_v63, %v83_v58  ;;  %v105_v4 = vadd.f32 %v103_v0, %v84_v59  ;;  %v174_v5 = vadd.f32 %v172_v1, %v157_v60  ;;  %v175_v6 = vadd.f32 %v173_v2, %v158_v61 }
  0x8b   :  { %106 = vst [vmem:[#allocation2] sm:$0xff] %v104_v3  ;;  %107 = vst [vmem:[#allocation2 + $0x8] sm:$0xff] %v105_v4 }
  0x8c   :  { %176 = vst [vmem:[#allocation2 + $0x10] sm:$0xff] %v174_v5  ;;  %177 = vst [vmem:[#allocation2 + $0x18] sm:$0xff] %v175_v6 }
  0x8d   :  { %223 = shalt.err (!%p220_p4)
}
  0x8e   :  { %s239_s5 = smov 256   ;;  %s240_s6 = smov 16  }
  0x8f   :  { %189 = dma.vmem_to_hbm [thread:$0]  %s184_s30, 512, %s297_s3, [#allocation3], %s239_s5, %s239_s5, %s240_s6  }
  0x90   :  { %232 = dma.done.wait [#allocation3], 512  }
  0x91   :  { %233 = vsyncadd [#allocation3], 4294966784 }
  0x92   :  { %193 = vsyncpa [#allocation3], 1 }

</bundles_post_ra>
